<compile_context>
chip_gen: v5e
topology: v5e:2x2
jax: 0.10.0
libtpu: 0.0.40
codegen_flags: <defaults>
</compile_context>

<pallas_src>
import functools

import jax
import jax.numpy as jnp
from jax.experimental import pallas as pl
from jax.experimental.pallas import tpu as pltpu

_LANE = 128


def _round_up(v, m):
    return ((v + m - 1) // m) * m


def _pad_axis(a, axis, target):
    pad = target - a.shape[axis]
    if pad <= 0:
        return a
    widths = [(0, 0)] * a.ndim
    widths[axis] = (0, pad)
    return jnp.pad(a, widths)


def _vmem_capacity_bytes():
    try:
        return int(pltpu.get_tpu_info().vmem_capacity_bytes)
    except Exception:            # conservative fallback: v7x per-TC VMEM
        return 64 << 20


def _mlp_kernel(x_ref, w1_ref, b1_ref, w2_ref, b2_ref, o_ref, acc_ref, *,
                compute_dtype):
    k = pl.program_id(1)

    @pl.when(k == 0)
    def _():
        acc_ref[...] = jnp.zeros_like(acc_ref)

    # hidden panel = relu(x @ W1[:, panel] + b1[panel]); x is cast in-kernel.
    x = x_ref[...].astype(compute_dtype)
    h = jnp.dot(x, w1_ref[...], preferred_element_type=jnp.float32)
    h = jnp.maximum(h + b1_ref[...], 0.0)            # b1 panel is (1, tk) f32

    # Accumulate this mid-panel's contribution to the f32 output accumulator.
    acc_ref[...] += jnp.dot(h.astype(compute_dtype), w2_ref[...],
                            preferred_element_type=jnp.float32)

    @pl.when(k == pl.num_programs(1) - 1)
    def _():
        o_ref[...] = (acc_ref[...] + b2_ref[...]).astype(o_ref.dtype)


def mlp_forward(x, w1, b1, w2, b2, *, row_tile=None,
                compute_dtype=jnp.bfloat16, out_dtype=None):
    """x: (N, in); w1: (in, mid); b1: (mid,); w2: (mid, out); b2: (out,).

    Default compute_dtype=bf16 (f32 accumulation).  Pass
    compute_dtype=jnp.float32 for PyTorch-f32 parity; pass
    out_dtype=jnp.bfloat16 to halve output HBM/VMEM traffic when the
    downstream consumer accepts bf16.
    Note: for genuinely tiny problems plain XLA fusion is competitive; this
    kernel keeps tiny feature dims unpadded to stay DMA-lean anyway.
    """
    n, in_size = x.shape
    in_w, mid = w1.shape
    mid_w, out_size = w2.shape
    assert in_w == in_size and mid_w == mid, "weight shapes inconsistent"
    b1 = jnp.asarray(b1).reshape(1, -1)
    b2 = jnp.asarray(b2).reshape(1, -1)
    assert b1.shape[1] == mid and b2.shape[1] == out_size

    if out_dtype is None:
        out_dtype = x.dtype
    compute_dtype = jnp.dtype(compute_dtype)
    out_dtype = jnp.dtype(out_dtype)
    x_item = jnp.dtype(x.dtype).itemsize
    comp_item = compute_dtype.itemsize
    out_item = out_dtype.itemsize

    # --- mid-dim (K) tiling: prefer 256/512-wide panels for v6e/v7x MXUs. ---
    if mid > 512:
        mid_p = _round_up(mid, _LANE)
        tk = next(c for c in (512, 256, 384, _LANE) if mid_p % c == 0)
    else:
        mid_p, tk = mid, mid          # single full-width panel (legal block)
    num_k = mid_p // tk

    # --- output width: lane-dense only when already >= one lane wide. -------
    out_p = _round_up(out_size, _LANE) if out_size >= _LANE else out_size

    # --- weights / biases (padded where needed, cast once; tiny vs x). ------
    w1_p = _pad_axis(w1, 1, mid_p).astype(compute_dtype)
    w2_p = _pad_axis(_pad_axis(w2, 0, mid_p), 1, out_p).astype(compute_dtype)
    b1_p = _pad_axis(b1, 1, mid_p).astype(jnp.float32)
    b2_p = _pad_axis(b2, 1, out_p).astype(jnp.float32)

    # --- row tile: largest sublane multiple fitting the VMEM budget. --------
    def vmem_needed(rt):
        return (2 * rt * in_size * x_item                      # x dbl buffer
                + 2 * rt * out_p * out_item                    # out dbl buffer
                + 2 * (in_size * tk + tk * out_p) * comp_item  # W panels
                + 2 * (tk + out_p) * 4                         # biases
                + rt * out_p * 4                               # f32 accumulator
                + rt * tk * 4)                                 # f32 hidden temp

    budget = int(_vmem_capacity_bytes() * 0.85)   # headroom for Mosaic scratch
    granule = 16                                  # sublane multiple, f32 & bf16
    if row_tile is None:
        row_tile = granule
        for cand in (1024, 768, 512, 384, 256, 128, 64, 32, 16):
            if vmem_needed(cand) <= budget:
                row_tile = cand
                break
    row_tile = max(granule, (row_tile // granule) * granule)
    row_tile = min(row_tile, max(granule, _round_up(n, granule)))

    grid = (pl.cdiv(n, row_tile), num_k)
    vmem_limit = min(budget, max(32 << 20, int(1.25 * vmem_needed(row_tile))))

    cost = pl.CostEstimate(
        flops=2 * n * (in_size * mid_p + mid_p * out_p),
        transcendentals=0,
        bytes_accessed=(n * in_size * x_item
                        + grid[0] * (w1_p.size + w2_p.size) * comp_item
                        + grid[0] * (b1_p.size + b2_p.size) * 4
                        + n * out_p * out_item))

    kernel = functools.partial(_mlp_kernel, compute_dtype=compute_dtype)

    out_full = pl.pallas_call(
        kernel,
        out_shape=jax.ShapeDtypeStruct((n, out_p), out_dtype),
        grid_spec=pltpu.PrefetchScalarGridSpec(
            num_scalar_prefetch=0,
            grid=grid,
            in_specs=[
                pl.BlockSpec((row_tile, in_size), lambda i, k: (i, 0)),  # x
                pl.BlockSpec((in_size, tk), lambda i, k: (0, k)),        # W1 panel
                pl.BlockSpec((1, tk), lambda i, k: (0, k)),              # b1 panel
                pl.BlockSpec((tk, out_p), lambda i, k: (k, 0)),          # W2 panel
                pl.BlockSpec((1, out_p), lambda i, k: (0, 0)),           # b2
            ],
            out_specs=pl.BlockSpec((row_tile, out_p), lambda i, k: (i, 0)),
            scratch_shapes=[pltpu.VMEM((row_tile, out_p), jnp.float32)],
        ),
        compiler_params=pltpu.CompilerParams(
            dimension_semantics=("parallel", "arbitrary"),
            vmem_limit_bytes=vmem_limit),
        cost_estimate=cost,
    )(x, w1_p, b1_p, w2_p, b2_p)

    if out_p != out_size:
        out_full = out_full[:, :out_size]
    return out_full


if __name__ == "__main__":
    # Small shapes consistent with the module; rows sized so the row grid has
    # several steps with row_tile=128 to exercise the pipeline.
    batch, input_size, mid_size, output_size = 512, 32, 32, 16

    key = jax.random.PRNGKey(0)
    kx, kw1, kb1, kw2, kb2 = jax.random.split(key, 5)

    x = jax.random.normal(kx, (batch, input_size), dtype=jnp.float32)
    bound1 = 1.0 / (input_size ** 0.5)
    w1 = jax.random.uniform(kw1, (input_size, mid_size), jnp.float32,
                            -bound1, bound1)
    b1 = jax.random.uniform(kb1, (mid_size,), jnp.float32, -bound1, bound1)
    bound2 = 1.0 / (mid_size ** 0.5)
    w2 = jax.random.uniform(kw2, (mid_size, output_size), jnp.float32,
                            -bound2, bound2)
    b2 = jax.random.uniform(kb2, (output_size,), jnp.float32, -bound2, bound2)

    # Pure-JAX reference (dropout = identity in eval mode).
    ref = jnp.maximum(x @ w1 + b1, 0.0) @ w2 + b2

    # f32 compute path: exact check of the tiling / accumulation logic.
    out_f32 = jax.block_until_ready(
        mlp_forward(x, w1, b1, w2, b2, row_tile=128,
                    compute_dtype=jnp.float32))
    assert out_f32.shape == (batch, output_size)
    assert jnp.allclose(out_f32, ref, atol=1e-5, rtol=1e-5), "f32 mismatch"

    # Default bf16 MXU path (f32 accumulation, in-kernel x cast).
    out_bf16 = jax.block_until_ready(mlp_forward(x, w1, b1, w2, b2))
    assert out_bf16.shape == (batch, output_size)
    assert jnp.allclose(out_bf16, ref, atol=5e-2, rtol=5e-2), "bf16 mismatch"

    print("KERNEL_OK")
</pallas_src>

<mosaic_0001>
module attributes {stable_mosaic.version = 11 : i64} {
  func.func @_mlp_kernel(%arg0: i32, %arg1: i32, %arg2: memref<128x32xf32, #tpu.memory_space<vmem>>, %arg3: memref<32x32xf32, #tpu.memory_space<vmem>>, %arg4: memref<1x32xf32, #tpu.memory_space<vmem>>, %arg5: memref<32x16xf32, #tpu.memory_space<vmem>>, %arg6: memref<1x16xf32, #tpu.memory_space<vmem>>, %arg7: memref<128x16xf32, #tpu.memory_space<vmem>>, %arg8: memref<128x16xf32, #tpu.memory_space<vmem>>) attributes {dimension_semantics = [#tpu.dimension_semantics<parallel>, #tpu.dimension_semantics<arbitrary>], iteration_bounds = array<i64: 4, 1>, scalar_prefetch = 0 : i64, scratch_operands = 1 : i64, tpu.core_type = #tpu.core_type<tc>, window_params = [{transform_indices = @transform_0, window_bounds = array<i64: 128, 32>}, {transform_indices = @transform_1, window_bounds = array<i64: 32, 32>}, {transform_indices = @transform_2, window_bounds = array<i64: 1, 32>}, {transform_indices = @transform_3, window_bounds = array<i64: 32, 16>}, {pipeline_mode = #tpu.pipeline_mode<synchronous>, transform_indices = @transform_4, window_bounds = array<i64: 1, 16>}, {transform_indices = @transform_5, window_bounds = array<i64: 128, 16>}]} {
    %c0_i32 = arith.constant 0 : i32
    %0 = arith.cmpi eq, %arg1, %c0_i32 : i32
    %1 = arith.extui %0 : i1 to i32
    %c0_i32_0 = arith.constant 0 : i32
    %2 = arith.cmpi ne, %1, %c0_i32_0 : i32
    scf.if %2 {
      %cst_16 = arith.constant 0.000000e+00 : f32
      %19 = vector.broadcast %cst_16 : f32 to vector<128x16xf32>
      %c0_17 = arith.constant 0 : index
      %c0_18 = arith.constant 0 : index
      %20 = vector.load %arg8[%c0_17, %c0_18] : memref<128x16xf32, #tpu.memory_space<vmem>>, vector<128x16xf32>
      tpu.vector_store %arg8[%c0_17, %c0_18], %19 {strides = array<i32>} : memref<128x16xf32, #tpu.memory_space<vmem>>, vector<128x16xf32>,
    } else {
    }
    %c0 = arith.constant 0 : index
    %c0_1 = arith.constant 0 : index
    %3 = vector.load %arg2[%c0, %c0_1] : memref<128x32xf32, #tpu.memory_space<vmem>>, vector<128x32xf32>
    %c0_2 = arith.constant 0 : index
    %c0_3 = arith.constant 0 : index
    %4 = vector.load %arg3[%c0_2, %c0_3] : memref<32x32xf32, #tpu.memory_space<vmem>>, vector<32x32xf32>
    %cst = arith.constant dense<0.000000e+00> : vector<128x32xf32>
    %5 = tpu.matmul %3, %4, %cst {dimension_numbers = #tpu.dot_dimension_numbers<[1], [0], [0], [1], [0, 0, 1, 1], [], []>} : vector<128x32xf32>, vector<32x32xf32>, vector<128x32xf32> -> vector<128x32xf32>
    %c0_4 = arith.constant 0 : index
    %c0_5 = arith.constant 0 : index
    %6 = vector.load %arg4[%c0_4, %c0_5] : memref<1x32xf32, #tpu.memory_space<vmem>>, vector<1x32xf32>
    %7 = vector.broadcast %6 : vector<1x32xf32> to vector<128x32xf32>
    %8 = arith.addf %5, %7 : vector<128x32xf32>
    %cst_6 = arith.constant 0.000000e+00 : f32
    %9 = vector.broadcast %cst_6 : f32 to vector<128x32xf32>
    %10 = arith.maximumf %8, %9 : vector<128x32xf32>
    %c0_7 = arith.constant 0 : index
    %c0_8 = arith.constant 0 : index
    %11 = vector.load %arg8[%c0_7, %c0_8] : memref<128x16xf32, #tpu.memory_space<vmem>>, vector<128x16xf32>
    %c0_9 = arith.constant 0 : index
    %c0_10 = arith.constant 0 : index
    %12 = vector.load %arg5[%c0_9, %c0_10] : memref<32x16xf32, #tpu.memory_space<vmem>>, vector<32x16xf32>
    %cst_11 = arith.constant dense<0.000000e+00> : vector<128x16xf32>
    %13 = tpu.matmul %10, %12, %cst_11 {dimension_numbers = #tpu.dot_dimension_numbers<[1], [0], [0], [1], [0, 0, 1, 1], [], []>} : vector<128x32xf32>, vector<32x16xf32>, vector<128x16xf32> -> vector<128x16xf32>
    %14 = arith.addf %11, %13 : vector<128x16xf32>
    %c0_12 = arith.constant 0 : index
    %c0_13 = arith.constant 0 : index
    %15 = vector.load %arg8[%c0_12, %c0_13] : memref<128x16xf32, #tpu.memory_space<vmem>>, vector<128x16xf32>
    tpu.vector_store %arg8[%c0_12, %c0_13], %14 {strides = array<i32>} : memref<128x16xf32, #tpu.memory_space<vmem>>, vector<128x16xf32>,
    %c0_i32_14 = arith.constant 0 : i32
    %16 = arith.cmpi eq, %arg1, %c0_i32_14 : i32
    %17 = arith.extui %16 : i1 to i32
    %c0_i32_15 = arith.constant 0 : i32
    %18 = arith.cmpi ne, %17, %c0_i32_15 : i32
    scf.if %18 {
      %c0_16 = arith.constant 0 : index
      %c0_17 = arith.constant 0 : index
      %19 = vector.load %arg8[%c0_16, %c0_17] : memref<128x16xf32, #tpu.memory_space<vmem>>, vector<128x16xf32>
      %c0_18 = arith.constant 0 : index
      %c0_19 = arith.constant 0 : index
      %20 = vector.load %arg6[%c0_18, %c0_19] : memref<1x16xf32, #tpu.memory_space<vmem>>, vector<1x16xf32>
      %21 = vector.broadcast %20 : vector<1x16xf32> to vector<128x16xf32>
      %22 = arith.addf %19, %21 : vector<128x16xf32>
      %c0_20 = arith.constant 0 : index
      %c0_21 = arith.constant 0 : index
      %23 = vector.load %arg7[%c0_20, %c0_21] : memref<128x16xf32, #tpu.memory_space<vmem>>, vector<128x16xf32>
      tpu.vector_store %arg7[%c0_20, %c0_21], %22 {strides = array<i32>} : memref<128x16xf32, #tpu.memory_space<vmem>>, vector<128x16xf32>,
    } else {
    }
    return
  }
  func.func @transform_0(%arg0: i32, %arg1: i32) -> (i32, i32) {
    %c0_i32 = arith.constant 0 : i32
    %c0_i32_0 = arith.constant 0 : i32
    return %arg0, %c0_i32 : i32, i32
  }
  func.func @transform_1(%arg0: i32, %arg1: i32) -> (i32, i32) {
    %c0_i32 = arith.constant 0 : i32
    %c0_i32_0 = arith.constant 0 : i32
    return %c0_i32, %arg1 : i32, i32
  }
  func.func @transform_2(%arg0: i32, %arg1: i32) -> (i32, i32) {
    %c0_i32 = arith.constant 0 : i32
    %c0_i32_0 = arith.constant 0 : i32
    return %c0_i32, %arg1 : i32, i32
  }
  func.func @transform_3(%arg0: i32, %arg1: i32) -> (i32, i32) {
    %c0_i32 = arith.constant 0 : i32
    %c0_i32_0 = arith.constant 0 : i32
    return %arg1, %c0_i32 : i32, i32
  }
  func.func @transform_4(%arg0: i32, %arg1: i32) -> (i32, i32) {
    %c0_i32 = arith.constant 0 : i32
    %c0_i32_0 = arith.constant 0 : i32
    %c0_i32_1 = arith.constant 0 : i32
    return %c0_i32, %c0_i32_0 : i32, i32
  }
  func.func @transform_5(%arg0: i32, %arg1: i32) -> (i32, i32) {
    %c0_i32 = arith.constant 0 : i32
    %c0_i32_0 = arith.constant 0 : i32
    return %arg0, %c0_i32 : i32, i32
  }
}

</mosaic_0001>

<bundles_post_ra>
// kernel: tpu_custom_call.1
= control target key start
LH: loop header
LB: loop body
LE: loop exit
PB: predicated region body
PF: predicated region fallthrough
CT: control target
= control target key end

     0   :  { %s932_s18 = smov 0   ;;  %s934_s19 = smov 0   ;;  %s1154_s0 = inlined_call_operand.vmem [shape: f32[512,32], index: 0, kind: input, shape index: {}]   ;;  %s1155_s1 = inlined_call_operand.vmem [shape: f32[32,32], index: 1, kind: input, shape index: {}]   ;;  %s1156_s2 = inlined_call_operand.vmem [shape: f32[1,32], index: 2, kind: input, shape index: {}]   ;;  %s1157_s3 = inlined_call_operand.vmem [shape: f32[32,16], index: 3, kind: input, shape index: {}]   ;;  %s1158_s4 = inlined_call_operand.vmem [shape: f32[1,16], index: 4, kind: input, shape index: {}]   ;;  %s1159_s5 = inlined_call_operand.vmem [shape: f32[512,16], index: 5, kind: output, shape index: {}]  }
   0x1   :  { %s936_s20 = smov 0  }
   0x2 LB: > { %s27_s21 = sadd.s32 1, %s895_s19  ;;  %p803_p0 = scmp.ge.s32.totalorder %s899_s20, 1  ;;  %s899_s20 = sphi %s936_s20, %s15_s20   ;;  %s895_s19 = sphi %s934_s19, %s1161_s19   ;;  %s891_s18 = sphi %s932_s18, %s1160_s18  }
   0x3   : > { %p29_p1 = scmp.ge.s32.totalorder %s27_s21, 4  ;;  %p228_p2 = scmp.lt.s32.totalorder %s899_s20, 5 }
   0x5   : > { %s1163_s21 = smov (%p29_p1, %s27_s21), 0  ;;  %p229_p3 = pnand %p803_p0, %p228_p2 }
   0x6   : > { %s804_s26 = sshll.u32 (!%p229_p3), %s891_s18, 4 }
   0x7   : > { %232 = sbr.rel (%p229_p3) target bundleno = 357 (0x165), region = 40  ;;  %p269_p4 = scmp.lt.s32.totalorder (!%p229_p3), %s804_s26, 63 }
   0xc   : > { %v333_v0 = vld [vmem:[%s1155_s1 + $0x18] sm:$0xff]  ;;  %v332_v1 = vld [vmem:[%s1155_s1 + $0x10] sm:$0xff]  ;;  %v331_v2 = vld [vmem:[%s1155_s1 + $0x8] sm:$0xff]  ;;  %s1165_s26 = smov (!%p269_p4, %s804_s26), 63  ;;  %vm338_vm0 = vcmask 261120   ;;  %vm297_vm1 = vcmask 130048  }
   0xd   : > { %842 = vmatpush.msra.mxu2 %v333_v0  ;;  %399 = vmatpush.msra.mxu0 %v333_v0  ;;  %v330_v3 = vld [vmem:[%s1155_s1] sm:$0xff]  ;;  %s805_s6 = sshll.u32 %s1165_s26, 3  ;;  %v487_v12 = vld [vmem:[%s1157_s3 + $0x18] sm:$0xff]  ;;  %v486_v21 = vld [vmem:[%s1157_s3 + $0x10] sm:$0xff]  ;;  %v901_v52 = vmov 0.0  }
   0xe   : > { %s970_s9 = scalar_lea.vmem %s1154_s0, %s805_s6  ;;  %846 = vmatpush.msra.mxu3 %v487_v12  ;;  %548 = vmatpush.msra.mxu1 %v487_v12  ;;  %v485_v22 = vld [vmem:[%s1157_s3 + $0x8] sm:$0xff]  ;;  %v484_v23 = vld [vmem:[%s1157_s3] sm:$0xff]  ;;  %298 = vst.msk [vmem:[#allocation2] sm:$0xff] %vm297_vm1, %v901_v52  ;;  %s1080_s28 = scalar_lea.vmem %s1159_s5, %s805_s6 }
   0xf   : > { %843 = vmatpush.msra.mxu2 %v332_v1  ;;  %400 = vmatpush.msra.mxu0 %v332_v1  ;;  %v322_v4 = vld [vmem:[%s970_s9 + $0x40] sm:$0xff]  ;;  %v323_v6 = vld [vmem:[%s970_s9 + $0x48] sm:$0xff]  ;;  %v324_v8 = vld [vmem:[%s970_s9 + $0x50] sm:$0xff]  ;;  %299 = vst.msk [vmem:[#allocation2 + $0x8] sm:$0xff] %vm297_vm1, %v901_v52 }
  0x10   : > { %v314_v5 = vld [vmem:[%s970_s9] sm:$0xff]  ;;  %v315_v7 = vld [vmem:[%s970_s9 + $0x8] sm:$0xff]  ;;  %v316_v9 = vld [vmem:[%s970_s9 + $0x10] sm:$0xff]  ;;  %847 = vmatpush.msra.mxu3 %v486_v21  ;;  %549 = vmatpush.msra.mxu1 %v486_v21  ;;  %300 = vst.msk [vmem:[#allocation2 + $0x10] sm:$0xff] %vm297_vm1, %v901_v52 }
  0x11   : > { %844 = vmatpush.msra.mxu2 %v331_v2  ;;  %401 = vmatpush.msra.mxu0 %v331_v2  ;;  %v325_v10 = vld [vmem:[%s970_s9 + $0x58] sm:$0xff]  ;;  %v326_v13 = vld [vmem:[%s970_s9 + $0x60] sm:$0xff]  ;;  %v327_v15 = vld [vmem:[%s970_s9 + $0x68] sm:$0xff]  ;;  %301 = vst.msk [vmem:[#allocation2 + $0x18] sm:$0xff] %vm297_vm1, %v901_v52 }
  0x12   : > { %v317_v11 = vld [vmem:[%s970_s9 + $0x18] sm:$0xff]  ;;  %v318_v14 = vld [vmem:[%s970_s9 + $0x20] sm:$0xff]  ;;  %v319_v16 = vld [vmem:[%s970_s9 + $0x28] sm:$0xff]  ;;  %848 = vmatpush.msra.mxu3 %v485_v22  ;;  %550 = vmatpush.msra.mxu1 %v485_v22  ;;  %302 = vst.msk [vmem:[#allocation2 + $0x20] sm:$0xff] %vm297_vm1, %v901_v52 }
  0x13   : > { %845 = vmatpush.msra.mxu2 %v330_v3  ;;  %402 = vmatpush.msra.mxu0 %v330_v3  ;;  %v328_v17 = vld [vmem:[%s970_s9 + $0x70] sm:$0xff]  ;;  %v329_v19 = vld [vmem:[%s970_s9 + $0x78] sm:$0xff]  ;;  %v1019_v24 = vld [vmem:[%s1156_s2] ss:$0 sm:$0xff]  ;;  %303 = vst.msk [vmem:[#allocation2 + $0x28] sm:$0xff] %vm297_vm1, %v901_v52 }
  0x14   : > { %816 = vmatmul.msk.f32.vlgmr.msra.gmra.mxu2 %vm338_vm0, %v322_v4  ;;  %808 = vmatmul.msk.f32.vlgmr.msra.gmra.mxu0 %vm338_vm0, %v314_v5  ;;  %v320_v18 = vld [vmem:[%s970_s9 + $0x30] sm:$0xff]  ;;  %v321_v20 = vld [vmem:[%s970_s9 + $0x38] sm:$0xff]  ;;  %304 = vst.msk [vmem:[#allocation2 + $0x30] sm:$0xff] %vm297_vm1, %v901_v52 }
  0x15   : > { %849 = vmatpush.msra.mxu3 %v484_v23  ;;  %551 = vmatpush.msra.mxu1 %v484_v23  ;;  %305 = vst.msk [vmem:[#allocation2 + $0x38] sm:$0xff] %vm297_vm1, %v901_v52 }
  0x16   : > { %306 = vst.msk [vmem:[#allocation2 + $0x40] sm:$0xff] %vm297_vm1, %v901_v52 }
  0x17   : > { %307 = vst.msk [vmem:[#allocation2 + $0x48] sm:$0xff] %vm297_vm1, %v901_v52  ;;  %v470_v22 = vld [vmem:[#allocation2 + $0x10] sm:$0xff] }
  0x18   : > { %308 = vst.msk [vmem:[#allocation2 + $0x50] sm:$0xff] %vm297_vm1, %v901_v52 }
  0x19   : > { %309 = vst.msk [vmem:[#allocation2 + $0x58] sm:$0xff] %vm297_vm1, %v901_v52 }
  0x1a   : > { %310 = vst.msk [vmem:[#allocation2 + $0x60] sm:$0xff] %vm297_vm1, %v901_v52 }
  0x1b   : > { %311 = vst.msk [vmem:[#allocation2 + $0x68] sm:$0xff] %vm297_vm1, %v901_v52 }
  0x1c   : > { %817 = vmatmul.msk.f32.gmra.mxu2 %vm338_vm0, %v323_v6  ;;  %809 = vmatmul.msk.f32.gmra.mxu0 %vm338_vm0, %v315_v7  ;;  %312 = vst.msk [vmem:[#allocation2 + $0x70] sm:$0xff] %vm297_vm1, %v901_v52 }
  0x1d   : > { %313 = vst.msk [vmem:[#allocation2 + $0x78] sm:$0xff] %vm297_vm1, %v901_v52 }
  0x24   : > { %818 = vmatmul.msk.f32.gmra.mxu2 %vm338_vm0, %v324_v8  ;;  %810 = vmatmul.msk.f32.gmra.mxu0 %vm338_vm0, %v316_v9 }
  0x2c   : > { %819 = vmatmul.msk.f32.gmra.mxu2 %vm338_vm0, %v325_v10  ;;  %811 = vmatmul.msk.f32.gmra.mxu0 %vm338_vm0, %v317_v11  ;;  %v468_v10 = vld [vmem:[#allocation2] sm:$0xff] }
  0x34   : > { %820 = vmatmul.msk.f32.gmra.mxu2 %vm338_vm0, %v326_v13  ;;  %812 = vmatmul.msk.f32.gmra.mxu0 %vm338_vm0, %v318_v14  ;;  %v469_v13 = vld [vmem:[#allocation2 + $0x8] sm:$0xff]  ;;  %v1073_v14 = vld [vmem:[%s1158_s4] ss:$0 sm:$0xff] }
  0x3c   : > { %821 = vmatmul.msk.f32.gmra.mxu2 %vm338_vm0, %v327_v15  ;;  %813 = vmatmul.msk.f32.gmra.mxu0 %vm338_vm0, %v319_v16 }
  0x44   : > { %822 = vmatmul.msk.f32.gmra.mxu2 %vm338_vm0, %v328_v17  ;;  %814 = vmatmul.msk.f32.gmra.mxu0 %vm338_vm0, %v320_v18  ;;  %v476_v18 = vld [vmem:[#allocation2 + $0x40] sm:$0xff] }
  0x4c   : > { %823 = vmatmul.msk.f32.gmra.mxu2 %vm338_vm0, %v329_v19  ;;  %815 = vmatmul.msk.f32.gmra.mxu0 %vm338_vm0, %v321_v20 }
  0x91   : > { %v404_v25 = vpop.f32.mrf.mxu0 }
  0x92   : > { %v405_v26 = vadd.f32 %v1019_v24, %v404_v25 }
  0x94   : > { %v452_v27 = vmax.f32 %v405_v26, 0.0  ;;  %v477_v26 = vld [vmem:[#allocation2 + $0x48] sm:$0xff] }
  0x96   : > { %824 = vmatmul.msk.f32.vlgmr.msra.gmra.mxu1 %vm338_vm0, %v452_v27 }
  0x97   : > { %v428_v28 = vpop.f32.mrf.mxu2 }
  0x98   : > { %v429_v29 = vadd.f32 %v1019_v24, %v428_v28 }
  0x99   : > { %v407_v30 = vpop.f32.mrf.mxu0 }
  0x9a   : > { %v460_v31 = vmax.f32 %v429_v29, 0.0  ;;  %v408_v32 = vadd.f32 %v1019_v24, %v407_v30 }
  0x9c   : > { %832 = vmatmul.msk.f32.vlgmr.msra.gmra.mxu3 %vm338_vm0, %v460_v31  ;;  %v453_v33 = vmax.f32 %v408_v32, 0.0  ;;  %v471_v31 = vld [vmem:[#allocation2 + $0x18] sm:$0xff] }
  0x9e   : > { %825 = vmatmul.msk.f32.gmra.mxu1 %vm338_vm0, %v453_v33 }
  0x9f   : > { %v431_v34 = vpop.f32.mrf.mxu2 }
  0xa0   : > { %v432_v35 = vadd.f32 %v1019_v24, %v431_v34 }
  0xa1   : > { %v410_v36 = vpop.f32.mrf.mxu0 }
  0xa2   : > { %v461_v37 = vmax.f32 %v432_v35, 0.0  ;;  %v411_v38 = vadd.f32 %v1019_v24, %v410_v36  ;;  %v478_v36 = vld [vmem:[#allocation2 + $0x50] sm:$0xff] }
  0xa4   : > { %833 = vmatmul.msk.f32.gmra.mxu3 %vm338_vm0, %v461_v37  ;;  %v454_v39 = vmax.f32 %v411_v38, 0.0 }
  0xa6   : > { %826 = vmatmul.msk.f32.gmra.mxu1 %vm338_vm0, %v454_v39 }
  0xa7   : > { %v434_v40 = vpop.f32.mrf.mxu2 }
  0xa8   : > { %v435_v41 = vadd.f32 %v1019_v24, %v434_v40 }
  0xa9   : > { %v413_v42 = vpop.f32.mrf.mxu0 }
  0xaa   : > { %v462_v43 = vmax.f32 %v435_v41, 0.0  ;;  %v414_v44 = vadd.f32 %v1019_v24, %v413_v42  ;;  %v472_v41 = vld [vmem:[#allocation2 + $0x20] sm:$0xff] }
  0xac   : > { %834 = vmatmul.msk.f32.gmra.mxu3 %vm338_vm0, %v462_v43  ;;  %v455_v45 = vmax.f32 %v414_v44, 0.0 }
  0xae   : > { %827 = vmatmul.msk.f32.gmra.mxu1 %vm338_vm0, %v455_v45 }
  0xaf   : > { %v437_v46 = vpop.f32.mrf.mxu2 }
  0xb0   : > { %v438_v47 = vadd.f32 %v1019_v24, %v437_v46  ;;  %v479_v46 = vld [vmem:[#allocation2 + $0x58] sm:$0xff] }
  0xb1   : > { %v416_v48 = vpop.f32.mrf.mxu0 }
  0xb2   : > { %v463_v49 = vmax.f32 %v438_v47, 0.0  ;;  %v417_v50 = vadd.f32 %v1019_v24, %v416_v48 }
  0xb4   : > { %835 = vmatmul.msk.f32.gmra.mxu3 %vm338_vm0, %v463_v49  ;;  %v456_v51 = vmax.f32 %v417_v50, 0.0 }
  0xb6   : > { %828 = vmatmul.msk.f32.gmra.mxu1 %vm338_vm0, %v456_v51  ;;  %v473_v51 = vld [vmem:[#allocation2 + $0x28] sm:$0xff] }
  0xb7   : > { %v440_v53 = vpop.f32.mrf.mxu2 }
  0xb8   : > { %v441_v54 = vadd.f32 %v1019_v24, %v440_v53 }
  0xb9   : > { %v419_v55 = vpop.f32.mrf.mxu0 }
  0xba   : > { %v464_v56 = vmax.f32 %v441_v54, 0.0  ;;  %v420_v57 = vadd.f32 %v1019_v24, %v419_v55 }
  0xbc   : > { %836 = vmatmul.msk.f32.gmra.mxu3 %vm338_vm0, %v464_v56  ;;  %v457_v58 = vmax.f32 %v420_v57, 0.0  ;;  %v480_v56 = vld [vmem:[#allocation2 + $0x60] sm:$0xff] }
  0xbe   : > { %829 = vmatmul.msk.f32.gmra.mxu1 %vm338_vm0, %v457_v58 }
  0xbf   : > { %v443_v59 = vpop.f32.mrf.mxu2 }
  0xc0   : > { %v444_v60 = vadd.f32 %v1019_v24, %v443_v59 }
  0xc1   : > { %v422_v61 = vpop.f32.mrf.mxu0 }
  0xc2   : > { %v465_v62 = vmax.f32 %v444_v60, 0.0  ;;  %v423_v63 = vadd.f32 %v1019_v24, %v422_v61  ;;  %v474_v61 = vld [vmem:[#allocation2 + $0x30] sm:$0xff] }
  0xc4   : > { %837 = vmatmul.msk.f32.gmra.mxu3 %vm338_vm0, %v465_v62  ;;  %v458_v0 = vmax.f32 %v423_v63, 0.0 }
  0xc6   : > { %830 = vmatmul.msk.f32.gmra.mxu1 %vm338_vm0, %v458_v0 }
  0xc7   : > { %v446_v1 = vpop.f32.mrf.mxu2 }
  0xc8   : > { %v447_v2 = vadd.f32 %v1019_v24, %v446_v1 }
  0xc9   : > { %v425_v3 = vpop.f32.mrf.mxu0 }
  0xca   : > { %v466_v4 = vmax.f32 %v447_v2, 0.0  ;;  %v426_v5 = vadd.f32 %v1019_v24, %v425_v3  ;;  %v481_v2 = vld [vmem:[#allocation2 + $0x68] sm:$0xff] }
  0xcc   : > { %838 = vmatmul.msk.f32.gmra.mxu3 %vm338_vm0, %v466_v4  ;;  %v459_v6 = vmax.f32 %v426_v5, 0.0 }
  0xce   : > { %831 = vmatmul.msk.f32.gmra.mxu1 %vm338_vm0, %v459_v6 }
  0xcf   : > { %v449_v7 = vpop.f32.mrf.mxu2 }
  0xd0   : > { %v450_v8 = vadd.f32 %v1019_v24, %v449_v7  ;;  %v475_v7 = vld [vmem:[#allocation2 + $0x38] sm:$0xff] }
  0xd2   : > { %v467_v9 = vmax.f32 %v450_v8, 0.0 }
  0xd4   : > { %839 = vmatmul.msk.f32.gmra.mxu3 %vm338_vm0, %v467_v9 }
 0x113   : > { %v553_v11 = vpop.f32.mrf.mxu1 }
 0x114   : > { %v601_v12 = vadd.f32 %v553_v11, %v468_v10 }
 0x116   : > { %618 = vst.msk [vmem:[#allocation2] sm:$0xff] %vm297_vm1, %v601_v12  ;;  %v482_v12 = vld [vmem:[#allocation2 + $0x70] sm:$0xff] }
 0x11b   : > { %v556_v15 = vpop.f32.mrf.mxu1 }
 0x11c   : > { %v602_v16 = vadd.f32 %v556_v15, %v469_v13 }
 0x11d   : > { %v637_v17 = vld [vmem:[#allocation2] sm:$0xff] }
 0x11e   : > { %v657_v19 = vadd.f32 %v1073_v14, %v637_v17  ;;  %619 = vst.msk [vmem:[#allocation2 + $0x8] sm:$0xff] %vm297_vm1, %v602_v16 }
 0x11f   : > { %v577_v20 = vpop.f32.mrf.mxu3 }
 0x120   : > { %673 = vst.msk [vmem:[%s1080_s28] sm:$0xff] %vm297_vm1, %v657_v19  ;;  %v609_v21 = vadd.f32 %v577_v20, %v476_v18  ;;  %v483_v20 = vld [vmem:[#allocation2 + $0x78] sm:$0xff] }
 0x122   : > { %626 = vst.msk [vmem:[#allocation2 + $0x40] sm:$0xff] %vm297_vm1, %v609_v21 }
 0x123   : > { %v559_v23 = vpop.f32.mrf.mxu1 }
 0x124   : > { %v603_v24 = vadd.f32 %v559_v23, %v470_v22 }
 0x125   : > { %v638_v25 = vld [vmem:[#allocation2 + $0x8] sm:$0xff] }
 0x126   : > { %v658_v27 = vadd.f32 %v1073_v14, %v638_v25  ;;  %620 = vst.msk [vmem:[#allocation2 + $0x10] sm:$0xff] %vm297_vm1, %v603_v24 }
 0x127   : > { %v580_v28 = vpop.f32.mrf.mxu3 }
 0x128   : > { %674 = vst.msk [vmem:[%s1080_s28 + $0x8] sm:$0xff] %vm297_vm1, %v658_v27  ;;  %v610_v29 = vadd.f32 %v580_v28, %v477_v26 }
 0x129   : > { %v645_v30 = vld [vmem:[#allocation2 + $0x40] sm:$0xff] }
 0x12a   : > { %v665_v32 = vadd.f32 %v1073_v14, %v645_v30  ;;  %627 = vst.msk [vmem:[#allocation2 + $0x48] sm:$0xff] %vm297_vm1, %v610_v29 }
 0x12b   : > { %v562_v33 = vpop.f32.mrf.mxu1 }
 0x12c   : > { %681 = vst.msk [vmem:[%s1080_s28 + $0x40] sm:$0xff] %vm297_vm1, %v665_v32  ;;  %v604_v34 = vadd.f32 %v562_v33, %v471_v31 }
 0x12d   : > { %v639_v35 = vld [vmem:[#allocation2 + $0x10] sm:$0xff] }
 0x12e   : > { %v659_v37 = vadd.f32 %v1073_v14, %v639_v35  ;;  %621 = vst.msk [vmem:[#allocation2 + $0x18] sm:$0xff] %vm297_vm1, %v604_v34 }
 0x12f   : > { %v583_v38 = vpop.f32.mrf.mxu3 }
 0x130   : > { %675 = vst.msk [vmem:[%s1080_s28 + $0x10] sm:$0xff] %vm297_vm1, %v659_v37  ;;  %v611_v39 = vadd.f32 %v583_v38, %v478_v36 }
 0x131   : > { %v646_v40 = vld [vmem:[#allocation2 + $0x48] sm:$0xff] }
 0x132   : > { %v666_v42 = vadd.f32 %v1073_v14, %v646_v40  ;;  %628 = vst.msk [vmem:[#allocation2 + $0x50] sm:$0xff] %vm297_vm1, %v611_v39 }
 0x133   : > { %v565_v43 = vpop.f32.mrf.mxu1 }
 0x134   : > { %682 = vst.msk [vmem:[%s1080_s28 + $0x48] sm:$0xff] %vm297_vm1, %v666_v42  ;;  %v605_v44 = vadd.f32 %v565_v43, %v472_v41 }
 0x135   : > { %v640_v45 = vld [vmem:[#allocation2 + $0x18] sm:$0xff] }
 0x136   : > { %v660_v47 = vadd.f32 %v1073_v14, %v640_v45  ;;  %622 = vst.msk [vmem:[#allocation2 + $0x20] sm:$0xff] %vm297_vm1, %v605_v44 }
 0x137   : > { %v586_v48 = vpop.f32.mrf.mxu3 }
 0x138   : > { %676 = vst.msk [vmem:[%s1080_s28 + $0x18] sm:$0xff] %vm297_vm1, %v660_v47  ;;  %v612_v49 = vadd.f32 %v586_v48, %v479_v46 }
 0x139   : > { %v647_v50 = vld [vmem:[#allocation2 + $0x50] sm:$0xff] }
 0x13a   : > { %v667_v52 = vadd.f32 %v1073_v14, %v647_v50  ;;  %629 = vst.msk [vmem:[#allocation2 + $0x58] sm:$0xff] %vm297_vm1, %v612_v49 }
 0x13b   : > { %v568_v53 = vpop.f32.mrf.mxu1 }
 0x13c   : > { %683 = vst.msk [vmem:[%s1080_s28 + $0x50] sm:$0xff] %vm297_vm1, %v667_v52  ;;  %v606_v54 = vadd.f32 %v568_v53, %v473_v51 }
 0x13d   : > { %v641_v55 = vld [vmem:[#allocation2 + $0x20] sm:$0xff] }
 0x13e   : > { %v661_v57 = vadd.f32 %v1073_v14, %v641_v55  ;;  %623 = vst.msk [vmem:[#allocation2 + $0x28] sm:$0xff] %vm297_vm1, %v606_v54 }
 0x13f   : > { %v589_v58 = vpop.f32.mrf.mxu3 }
 0x140   : > { %677 = vst.msk [vmem:[%s1080_s28 + $0x20] sm:$0xff] %vm297_vm1, %v661_v57  ;;  %v613_v59 = vadd.f32 %v589_v58, %v480_v56 }
 0x141   : > { %v648_v60 = vld [vmem:[#allocation2 + $0x58] sm:$0xff] }
 0x142   : > { %v668_v62 = vadd.f32 %v1073_v14, %v648_v60  ;;  %630 = vst.msk [vmem:[#allocation2 + $0x60] sm:$0xff] %vm297_vm1, %v613_v59 }
 0x143   : > { %v571_v63 = vpop.f32.mrf.mxu1 }
 0x144   : > { %684 = vst.msk [vmem:[%s1080_s28 + $0x58] sm:$0xff] %vm297_vm1, %v668_v62  ;;  %v607_v0 = vadd.f32 %v571_v63, %v474_v61 }
 0x145   : > { %v642_v1 = vld [vmem:[#allocation2 + $0x28] sm:$0xff] }
 0x146   : > { %v662_v3 = vadd.f32 %v1073_v14, %v642_v1  ;;  %624 = vst.msk [vmem:[#allocation2 + $0x30] sm:$0xff] %vm297_vm1, %v607_v0 }
 0x147   : > { %v592_v4 = vpop.f32.mrf.mxu3 }
 0x148   : > { %678 = vst.msk [vmem:[%s1080_s28 + $0x28] sm:$0xff] %vm297_vm1, %v662_v3  ;;  %v614_v5 = vadd.f32 %v592_v4, %v481_v2 }
 0x149   : > { %v649_v6 = vld [vmem:[#allocation2 + $0x60] sm:$0xff] }
 0x14a   : > { %v669_v8 = vadd.f32 %v1073_v14, %v649_v6  ;;  %631 = vst.msk [vmem:[#allocation2 + $0x68] sm:$0xff] %vm297_vm1, %v614_v5 }
 0x14b   : > { %v574_v9 = vpop.f32.mrf.mxu1 }
 0x14c   : > { %685 = vst.msk [vmem:[%s1080_s28 + $0x60] sm:$0xff] %vm297_vm1, %v669_v8  ;;  %v608_v10 = vadd.f32 %v574_v9, %v475_v7 }
 0x14d   : > { %v643_v11 = vld [vmem:[#allocation2 + $0x30] sm:$0xff] }
 0x14e   : > { %v663_v13 = vadd.f32 %v1073_v14, %v643_v11  ;;  %625 = vst.msk [vmem:[#allocation2 + $0x38] sm:$0xff] %vm297_vm1, %v608_v10 }
 0x14f   : > { %v595_v15 = vpop.f32.mrf.mxu3 }
 0x150   : > { %679 = vst.msk [vmem:[%s1080_s28 + $0x30] sm:$0xff] %vm297_vm1, %v663_v13  ;;  %v615_v16 = vadd.f32 %v595_v15, %v482_v12 }
 0x151   : > { %v650_v17 = vld [vmem:[#allocation2 + $0x68] sm:$0xff] }
 0x152   : > { %v670_v18 = vadd.f32 %v1073_v14, %v650_v17  ;;  %632 = vst.msk [vmem:[#allocation2 + $0x70] sm:$0xff] %vm297_vm1, %v615_v16 }
 0x154   : > { %686 = vst.msk [vmem:[%s1080_s28 + $0x68] sm:$0xff] %vm297_vm1, %v670_v18 }
 0x155   : > { %v644_v19 = vld [vmem:[#allocation2 + $0x38] sm:$0xff] }
 0x156   : > { %v664_v21 = vadd.f32 %v1073_v14, %v644_v19 }
 0x157   : > { %v598_v22 = vpop.f32.mrf.mxu3 }
 0x158   : > { %680 = vst.msk [vmem:[%s1080_s28 + $0x38] sm:$0xff] %vm297_vm1, %v664_v21  ;;  %v616_v23 = vadd.f32 %v598_v22, %v483_v20 }
 0x159   : > { %v651_v24 = vld [vmem:[#allocation2 + $0x70] sm:$0xff] }
 0x15a   : > { %v671_v25 = vadd.f32 %v1073_v14, %v651_v24  ;;  %633 = vst.msk [vmem:[#allocation2 + $0x78] sm:$0xff] %vm297_vm1, %v616_v23 }
 0x15c   : > { %687 = vst.msk [vmem:[%s1080_s28 + $0x70] sm:$0xff] %vm297_vm1, %v671_v25 }
 0x161   : > { %v652_v26 = vld [vmem:[#allocation2 + $0x78] sm:$0xff] }
 0x162   : > { %v672_v27 = vadd.f32 %v1073_v14, %v652_v26 }
 0x164   : > { %688 = vst.msk [vmem:[%s1080_s28 + $0x78] sm:$0xff] %vm297_vm1, %v672_v27 }
 0x165 PF: > { %s15_s20 = sadd.s32 1, %s899_s20   ;;  %s1160_s18 = smov %s895_s19 }
 0x166   : > { %p12_p5 = scmp.ge.s32.totalorder %s15_s20, 6   ;;  %s1161_s19 = smov %s1163_s21 }
 0x168   :  { %14 = sbr.rel (!%p12_p5) target bundleno = 2 (0x2), region = 87 }

</bundles_post_ra>
